<compile_context>
chip_gen: v5e
topology: v5e:2x2
jax: 0.10.0
libtpu: 0.0.40
codegen_flags: <defaults>
</compile_context>

<pallas_src>
import jax
import jax.numpy as jnp
from jax.experimental import pallas as pl
from jax.experimental.pallas import tpu as pltpu


def _round_up(x, m):
    return (x + m - 1) // m * m


def gmf_kernel(text_ref, img_ref, wt_ref, bt_ref, wi_ref, bi_ref,
               wg_img_ref, wg_text_ref, bg_ref, out_ref):
    """One tile of rows: full GMF forward on (tm, Hp) blocks.

    text_ref, img_ref : (tm, Hp) bf16
    wt_ref, wi_ref    : (Hp, Hp) bf16  (y = x @ W + b layout)
    bt_ref, bi_ref    : (1, Hp)  f32
    wg_img_ref        : (1, Hp)  f32   gate weight row for the img half of concat
    wg_text_ref       : (1, Hp)  f32   gate weight row for the text half of concat
    bg_ref            : (1, 1)   f32   scalar in SMEM
    out_ref           : (tm, Hp) f32
    """
    # bf16 MXU matmuls with f32 accumulation; nonlinearity in f32.
    new_img = jnp.tanh(
        jnp.dot(img_ref[...], wi_ref[...], preferred_element_type=jnp.float32)
        + bi_ref[...]
    )
    new_text = jnp.tanh(
        jnp.dot(text_ref[...], wt_ref[...], preferred_element_type=jnp.float32)
        + bt_ref[...]
    )

    # Gate: VPU multiply + lane reduction (XLU) instead of two (tm,Hp)@(Hp,1)
    # matmuls that would waste >99% of the MXU width.
    gate_logit = jnp.sum(
        new_img * wg_img_ref[...] + new_text * wg_text_ref[...],
        axis=-1, keepdims=True,
    ) + bg_ref[0, 0]                                     # (tm, 1) f32
    gate = jax.nn.sigmoid(gate_logit)

    # Blend with one fewer multiply: gate*img + (1-gate)*text == text + gate*(img-text)
    out = new_text + gate * (new_img - new_text)
    out_ref[...] = out.astype(out_ref.dtype)


def gmf_forward(att_text_features, att_img_features, params, *, tm=None):
    """att_*_features: (B, S, H) float32. Returns (B, S, H) float32."""
    B, S, H = att_text_features.shape
    M = B * S
    Hp = _round_up(H, 128)            # lane-dense blocks (MXU width, unmasked vst)

    # Row-tile size: multiple of 16 (bf16 sublane pack); >=2 grid steps when M
    # allows so the "parallel" axis can shard across v7x's 2 TensorCores.
    if tm is None:
        if M >= 1024:
            tm = 512
        elif M >= 32:
            tm = _round_up((M + 1) // 2, 16)
        else:
            tm = _round_up(M, 16)
    else:
        tm = _round_up(max(tm, 16), 16)
    Mp = _round_up(M, tm)             # cdiv-style grid via padding: no dropped rows
    grid = (Mp // tm,)

    # --- prepare padded / cast operands -------------------------------------
    def rows(x):                      # (B,S,H) f32 -> (Mp,Hp) bf16
        x2 = x.reshape(M, H).astype(jnp.bfloat16)
        return jnp.pad(x2, ((0, Mp - M), (0, Hp - H)))

    def padw(w):                      # (H,H) -> (Hp,Hp) bf16
        return jnp.pad(w, ((0, Hp - H), (0, Hp - H))).astype(jnp.bfloat16)

    def padv(v):                      # (H,)/(H,1) -> (1,Hp) f32
        return jnp.pad(v.reshape(1, H).astype(jnp.float32), ((0, 0), (0, Hp - H)))

    text2d = rows(att_text_features)
    img2d = rows(att_img_features)
    wt = padw(params["text_w"])
    wi = padw(params["img_w"])
    bt = padv(params["text_b"])
    bi = padv(params["img_b"])
    wg_img = padv(params["gate_w_img"])      # concat order is [new_img, new_text]
    wg_text = padv(params["gate_w_text"])
    bg = params["gate_b"].reshape(1, 1).astype(jnp.float32)

    # Rough VMEM budget (double-buffered rows + weights + vectors), clamped to a
    # value that is safe on every generation (v7x physical VMEM is 64 MiB).
    est = (2 * 2 * tm * Hp * 2            # bf16 text+img rows, double-buffered
           + 2 * tm * Hp * 4              # f32 output rows, double-buffered
           + 2 * 2 * Hp * Hp * 2          # bf16 weights (worst case double-buffered)
           + 4 * 2 * Hp * 4)              # bias / gate-weight rows
    vmem_limit = min(max(int(est * 1.25), 32 * 1024 * 1024), 48 * 1024 * 1024)

    def build(single_buffer_weights):
        if single_buffer_weights:
            # Constant-index (H,H) weights: single-buffer to halve their VMEM
            # footprint (matters most on v7x's 64 MiB VMEM).
            w_spec = pl.BlockSpec((Hp, Hp), lambda i: (0, 0),
                                  pipeline_mode=pl.Buffered(1))
        else:
            w_spec = pl.BlockSpec((Hp, Hp), lambda i: (0, 0))
        row_spec = pl.BlockSpec((tm, Hp), lambda i: (i, 0))
        vec_spec = pl.BlockSpec((1, Hp), lambda i: (0, 0))
        smem_spec = pl.BlockSpec(memory_space=pltpu.MemorySpace.SMEM)

        return pl.pallas_call(
            gmf_kernel,
            out_shape=jax.ShapeDtypeStruct((Mp, Hp), jnp.float32),
            grid_spec=pltpu.PrefetchScalarGridSpec(
                num_scalar_prefetch=0,
                grid=grid,
                in_specs=[
                    row_spec,   # text rows (bf16)
                    row_spec,   # img rows (bf16)
                    w_spec,     # Wt (bf16)
                    vec_spec,   # bt (f32)
                    w_spec,     # Wi (bf16)
                    vec_spec,   # bi (f32)
                    vec_spec,   # Wg row, img half (f32)
                    vec_spec,   # Wg row, text half (f32)
                    smem_spec,  # bg scalar in SMEM
                ],
                out_specs=row_spec,
            ),
            compiler_params=pltpu.CompilerParams(
                dimension_semantics=("parallel",),
                vmem_limit_bytes=vmem_limit,
            ),
        )

    args = (text2d, img2d, wt, bt, wi, bi, wg_img, wg_text, bg)
    try:
        out2d = build(single_buffer_weights=True)(*args)
    except Exception:
        # pl.Buffered(1) single-buffering not supported by this jax/libtpu build;
        # fall back to default double-buffered weight blocks.
        out2d = build(single_buffer_weights=False)(*args)

    return out2d[:M, :H].reshape(B, S, H)


def init_params(key, hidden_dim):
    """Deterministic synthetic parameters matching nn.Linear shapes."""
    ks = jax.random.split(key, 6)
    H = hidden_dim
    scale = 1.0 / jnp.sqrt(H)
    # PyTorch Linear stores weight as (out, in); we store as (in, out) so y = x @ W + b.
    text_w = jax.random.uniform(ks[0], (H, H), jnp.float32, -scale, scale)
    text_b = jax.random.uniform(ks[1], (H,), jnp.float32, -scale, scale)
    img_w = jax.random.uniform(ks[2], (H, H), jnp.float32, -scale, scale)
    img_b = jax.random.uniform(ks[3], (H,), jnp.float32, -scale, scale)
    scale_g = 1.0 / jnp.sqrt(2 * H)
    gate_w = jax.random.uniform(ks[4], (2 * H, 1), jnp.float32, -scale_g, scale_g)
    gate_b = jax.random.uniform(ks[5], (1,), jnp.float32, -scale_g, scale_g)
    return {
        "text_w": text_w, "text_b": text_b,
        "img_w": img_w, "img_b": img_b,
        "gate_w_img": gate_w[:H],    # concat order is [new_img, new_text]
        "gate_w_text": gate_w[H:],
        "gate_b": gate_b,
    }


def gmf_reference(text, img, params):
    """Pure-JAX f32 reference for sanity checking."""
    new_img = jnp.tanh(img @ params["img_w"] + params["img_b"])
    new_text = jnp.tanh(text @ params["text_w"] + params["text_b"])
    gate = jax.nn.sigmoid(
        new_img @ params["gate_w_img"]
        + new_text @ params["gate_w_text"]
        + params["gate_b"]
    )
    return gate * new_img + (1.0 - gate) * new_text


if __name__ == "__main__":
    B, S, H = 2, 8, 32
    key = jax.random.PRNGKey(0)
    k_params, k_text, k_img = jax.random.split(key, 3)

    params = init_params(k_params, H)
    att_text = jax.random.normal(k_text, (B, S, H), jnp.float32)
    att_img = jax.random.normal(k_img, (B, S, H), jnp.float32)

    out = gmf_forward(att_text, att_img, params)
    out = jax.block_until_ready(out)

    ref = gmf_reference(att_text, att_img, params)
    assert out.shape == (B, S, H)
    # bf16 matmuls inside the kernel (f32 accumulation) -> relaxed tolerance
    # against the pure-f32 reference.
    assert jnp.allclose(out, ref, atol=3e-2, rtol=3e-2), "mismatch vs reference"

    print("KERNEL_OK")
</pallas_src>

<mosaic_0001>
module attributes {stable_mosaic.version = 11 : i64} {
  func.func @gmf_kernel(%arg0: i32, %arg1: memref<16x128xbf16, #tpu.memory_space<vmem>>, %arg2: memref<16x128xbf16, #tpu.memory_space<vmem>>, %arg3: memref<128x128xbf16, #tpu.memory_space<vmem>>, %arg4: memref<1x128xf32, #tpu.memory_space<vmem>>, %arg5: memref<128x128xbf16, #tpu.memory_space<vmem>>, %arg6: memref<1x128xf32, #tpu.memory_space<vmem>>, %arg7: memref<1x128xf32, #tpu.memory_space<vmem>>, %arg8: memref<1x128xf32, #tpu.memory_space<vmem>>, %arg9: memref<1x1xf32, #tpu.memory_space<smem>>, %arg10: memref<16x128xf32, #tpu.memory_space<vmem>>) attributes {dimension_semantics = [#tpu.dimension_semantics<parallel>], iteration_bounds = array<i64: 1>, scalar_prefetch = 0 : i64, scratch_operands = 0 : i64, tpu.core_type = #tpu.core_type<tc>, window_params = [{transform_indices = @transform_0, window_bounds = array<i64: 16, 128>}, {transform_indices = @transform_1, window_bounds = array<i64: 16, 128>}, {pipeline_mode = #tpu.pipeline_mode<synchronous>, transform_indices = @transform_2, window_bounds = array<i64: 128, 128>}, {pipeline_mode = #tpu.pipeline_mode<synchronous>, transform_indices = @transform_3, window_bounds = array<i64: 1, 128>}, {pipeline_mode = #tpu.pipeline_mode<synchronous>, transform_indices = @transform_4, window_bounds = array<i64: 128, 128>}, {pipeline_mode = #tpu.pipeline_mode<synchronous>, transform_indices = @transform_5, window_bounds = array<i64: 1, 128>}, {pipeline_mode = #tpu.pipeline_mode<synchronous>, transform_indices = @transform_6, window_bounds = array<i64: 1, 128>}, {pipeline_mode = #tpu.pipeline_mode<synchronous>, transform_indices = @transform_7, window_bounds = array<i64: 1, 128>}, {transform_indices = @transform_8, window_bounds = array<i64: 1, 1>}, {transform_indices = @transform_9, window_bounds = array<i64: 16, 128>}]} {
    %c0 = arith.constant 0 : index
    %c0_0 = arith.constant 0 : index
    %0 = vector.load %arg2[%c0, %c0_0] : memref<16x128xbf16, #tpu.memory_space<vmem>>, vector<16x128xbf16>
    %c0_1 = arith.constant 0 : index
    %c0_2 = arith.constant 0 : index
    %1 = vector.load %arg5[%c0_1, %c0_2] : memref<128x128xbf16, #tpu.memory_space<vmem>>, vector<128x128xbf16>
    %cst = arith.constant dense<0.000000e+00> : vector<16x128xf32>
    %2 = tpu.matmul %0, %1, %cst {dimension_numbers = #tpu.dot_dimension_numbers<[1], [0], [0], [1], [0, 0, 1, 1], [], []>} : vector<16x128xbf16>, vector<128x128xbf16>, vector<16x128xf32> -> vector<16x128xf32>
    %c0_3 = arith.constant 0 : index
    %c0_4 = arith.constant 0 : index
    %3 = vector.load %arg6[%c0_3, %c0_4] : memref<1x128xf32, #tpu.memory_space<vmem>>, vector<1x128xf32>
    %4 = vector.broadcast %3 : vector<1x128xf32> to vector<16x128xf32>
    %5 = arith.addf %2, %4 : vector<16x128xf32>
    %6 = math.tanh %5 : vector<16x128xf32>
    %c0_5 = arith.constant 0 : index
    %c0_6 = arith.constant 0 : index
    %7 = vector.load %arg1[%c0_5, %c0_6] : memref<16x128xbf16, #tpu.memory_space<vmem>>, vector<16x128xbf16>
    %c0_7 = arith.constant 0 : index
    %c0_8 = arith.constant 0 : index
    %8 = vector.load %arg3[%c0_7, %c0_8] : memref<128x128xbf16, #tpu.memory_space<vmem>>, vector<128x128xbf16>
    %cst_9 = arith.constant dense<0.000000e+00> : vector<16x128xf32>
    %9 = tpu.matmul %7, %8, %cst_9 {dimension_numbers = #tpu.dot_dimension_numbers<[1], [0], [0], [1], [0, 0, 1, 1], [], []>} : vector<16x128xbf16>, vector<128x128xbf16>, vector<16x128xf32> -> vector<16x128xf32>
    %c0_10 = arith.constant 0 : index
    %c0_11 = arith.constant 0 : index
    %10 = vector.load %arg4[%c0_10, %c0_11] : memref<1x128xf32, #tpu.memory_space<vmem>>, vector<1x128xf32>
    %11 = vector.broadcast %10 : vector<1x128xf32> to vector<16x128xf32>
    %12 = arith.addf %9, %11 : vector<16x128xf32>
    %13 = math.tanh %12 : vector<16x128xf32>
    %c0_12 = arith.constant 0 : index
    %c0_13 = arith.constant 0 : index
    %14 = vector.load %arg7[%c0_12, %c0_13] : memref<1x128xf32, #tpu.memory_space<vmem>>, vector<1x128xf32>
    %15 = vector.broadcast %14 : vector<1x128xf32> to vector<16x128xf32>
    %16 = arith.mulf %6, %15 : vector<16x128xf32>
    %c0_14 = arith.constant 0 : index
    %c0_15 = arith.constant 0 : index
    %17 = vector.load %arg8[%c0_14, %c0_15] : memref<1x128xf32, #tpu.memory_space<vmem>>, vector<1x128xf32>
    %18 = vector.broadcast %17 : vector<1x128xf32> to vector<16x128xf32>
    %19 = arith.mulf %13, %18 : vector<16x128xf32>
    %20 = arith.addf %16, %19 : vector<16x128xf32>
    %cst_16 = arith.constant dense<0.000000e+00> : vector<16xf32>
    %21 = vector.multi_reduction <add>, %20, %cst_16 [1] : vector<16x128xf32> to vector<16xf32>
    %22 = vector.shape_cast %21 : vector<16xf32> to vector<16x1xf32>
    %c0_17 = arith.constant 0 : index
    %c0_18 = arith.constant 0 : index
    %23 = memref.load %arg9[%c0_17, %c0_18] : memref<1x1xf32, #tpu.memory_space<smem>>
    %24 = vector.broadcast %23 : f32 to vector<16x1xf32>
    %25 = arith.addf %22, %24 : vector<16x1xf32>
    %26 = arith.negf %25 : vector<16x1xf32>
    %27 = math.exp %26 : vector<16x1xf32>
    %cst_19 = arith.constant 1.000000e+00 : f32
    %28 = vector.broadcast %cst_19 : f32 to vector<16x1xf32>
    %29 = arith.addf %28, %27 : vector<16x1xf32>
    %30 = arith.divf %28, %29 : vector<16x1xf32>
    %31 = arith.subf %6, %13 : vector<16x128xf32>
    %32 = vector.broadcast %30 : vector<16x1xf32> to vector<16x128xf32>
    %33 = arith.mulf %32, %31 : vector<16x128xf32>
    %34 = arith.addf %13, %33 : vector<16x128xf32>
    %c0_20 = arith.constant 0 : index
    %c0_21 = arith.constant 0 : index
    %35 = vector.load %arg10[%c0_20, %c0_21] : memref<16x128xf32, #tpu.memory_space<vmem>>, vector<16x128xf32>
    tpu.vector_store %arg10[%c0_20, %c0_21], %34 {strides = array<i32>} : memref<16x128xf32, #tpu.memory_space<vmem>>, vector<16x128xf32>,
    return
  }
  func.func @transform_0(%arg0: i32) -> (i32, i32) {
    %c0_i32 = arith.constant 0 : i32
    %c0_i32_0 = arith.constant 0 : i32
    return %arg0, %c0_i32 : i32, i32
  }
  func.func @transform_1(%arg0: i32) -> (i32, i32) {
    %c0_i32 = arith.constant 0 : i32
    %c0_i32_0 = arith.constant 0 : i32
    return %arg0, %c0_i32 : i32, i32
  }
  func.func @transform_2(%arg0: i32) -> (i32, i32) {
    %c0_i32 = arith.constant 0 : i32
    %c0_i32_0 = arith.constant 0 : i32
    %c0_i32_1 = arith.constant 0 : i32
    return %c0_i32, %c0_i32_0 : i32, i32
  }
  func.func @transform_3(%arg0: i32) -> (i32, i32) {
    %c0_i32 = arith.constant 0 : i32
    %c0_i32_0 = arith.constant 0 : i32
    %c0_i32_1 = arith.constant 0 : i32
    return %c0_i32, %c0_i32_0 : i32, i32
  }
  func.func @transform_4(%arg0: i32) -> (i32, i32) {
    %c0_i32 = arith.constant 0 : i32
    %c0_i32_0 = arith.constant 0 : i32
    %c0_i32_1 = arith.constant 0 : i32
    return %c0_i32, %c0_i32_0 : i32, i32
  }
  func.func @transform_5(%arg0: i32) -> (i32, i32) {
    %c0_i32 = arith.constant 0 : i32
    %c0_i32_0 = arith.constant 0 : i32
    %c0_i32_1 = arith.constant 0 : i32
    return %c0_i32, %c0_i32_0 : i32, i32
  }
  func.func @transform_6(%arg0: i32) -> (i32, i32) {
    %c0_i32 = arith.constant 0 : i32
    %c0_i32_0 = arith.constant 0 : i32
    %c0_i32_1 = arith.constant 0 : i32
    return %c0_i32, %c0_i32_0 : i32, i32
  }
  func.func @transform_7(%arg0: i32) -> (i32, i32) {
    %c0_i32 = arith.constant 0 : i32
    %c0_i32_0 = arith.constant 0 : i32
    %c0_i32_1 = arith.constant 0 : i32
    return %c0_i32, %c0_i32_0 : i32, i32
  }
  func.func @transform_8(%arg0: i32) -> (i32, i32) {
    %c0_i32 = arith.constant 0 : i32
    %c0_i32_0 = arith.constant 0 : i32
    %c0_i32_1 = arith.constant 0 : i32
    return %c0_i32, %c0_i32_0 : i32, i32
  }
  func.func @transform_9(%arg0: i32) -> (i32, i32) {
    %c0_i32 = arith.constant 0 : i32
    %c0_i32_0 = arith.constant 0 : i32
    return %arg0, %c0_i32 : i32, i32
  }
}

module attributes {stable_mosaic.version = 11 : i64} {
  func.func @gmf_kernel(%arg0: i32, %arg1: memref<16x128xbf16, #tpu.memory_space<vmem>>, %arg2: memref<16x128xbf16, #tpu.memory_space<vmem>>, %arg3: memref<128x128xbf16, #tpu.memory_space<vmem>>, %arg4: memref<1x128xf32, #tpu.memory_space<vmem>>, %arg5: memref<128x128xbf16, #tpu.memory_space<vmem>>, %arg6: memref<1x128xf32, #tpu.memory_space<vmem>>, %arg7: memref<1x128xf32, #tpu.memory_space<vmem>>, %arg8: memref<1x128xf32, #tpu.memory_space<vmem>>, %arg9: memref<1x1xf32, #tpu.memory_space<smem>>, %arg10: memref<16x128xf32, #tpu.memory_space<vmem>>) attributes {dimension_semantics = [#tpu.dimension_semantics<parallel>], iteration_bounds = array<i64: 1>, scalar_prefetch = 0 : i64, scratch_operands = 0 : i64, tpu.core_type = #tpu.core_type<tc>, window_params = [{transform_indices = @transform_0, window_bounds = array<i64: 16, 128>}, {transform_indices = @transform_1, window_bounds = array<i64: 16, 128>}, {pipeline_mode = #tpu.pipeline_mode<synchronous>, transform_indices = @transform_2, window_bounds = array<i64: 128, 128>}, {pipeline_mode = #tpu.pipeline_mode<synchronous>, transform_indices = @transform_3, window_bounds = array<i64: 1, 128>}, {pipeline_mode = #tpu.pipeline_mode<synchronous>, transform_indices = @transform_4, window_bounds = array<i64: 128, 128>}, {pipeline_mode = #tpu.pipeline_mode<synchronous>, transform_indices = @transform_5, window_bounds = array<i64: 1, 128>}, {pipeline_mode = #tpu.pipeline_mode<synchronous>, transform_indices = @transform_6, window_bounds = array<i64: 1, 128>}, {pipeline_mode = #tpu.pipeline_mode<synchronous>, transform_indices = @transform_7, window_bounds = array<i64: 1, 128>}, {transform_indices = @transform_8, window_bounds = array<i64: 1, 1>}, {transform_indices = @transform_9, window_bounds = array<i64: 16, 128>}]} {
    %c0 = arith.constant 0 : index
    %c0_0 = arith.constant 0 : index
    %0 = vector.load %arg2[%c0, %c0_0] : memref<16x128xbf16, #tpu.memory_space<vmem>>, vector<16x128xbf16>
    %c0_1 = arith.constant 0 : index
    %c0_2 = arith.constant 0 : index
    %1 = vector.load %arg5[%c0_1, %c0_2] : memref<128x128xbf16, #tpu.memory_space<vmem>>, vector<128x128xbf16>
    %cst = arith.constant dense<0.000000e+00> : vector<16x128xf32>
    %2 = tpu.matmul %0, %1, %cst {dimension_numbers = #tpu.dot_dimension_numbers<[1], [0], [0], [1], [0, 0, 1, 1], [], []>} : vector<16x128xbf16>, vector<128x128xbf16>, vector<16x128xf32> -> vector<16x128xf32>
    %c0_3 = arith.constant 0 : index
    %c0_4 = arith.constant 0 : index
    %3 = vector.load %arg6[%c0_3, %c0_4] : memref<1x128xf32, #tpu.memory_space<vmem>>, vector<1x128xf32>
    %4 = vector.broadcast %3 : vector<1x128xf32> to vector<16x128xf32>
    %5 = arith.addf %2, %4 : vector<16x128xf32>
    %6 = math.tanh %5 : vector<16x128xf32>
    %c0_5 = arith.constant 0 : index
    %c0_6 = arith.constant 0 : index
    %7 = vector.load %arg1[%c0_5, %c0_6] : memref<16x128xbf16, #tpu.memory_space<vmem>>, vector<16x128xbf16>
    %c0_7 = arith.constant 0 : index
    %c0_8 = arith.constant 0 : index
    %8 = vector.load %arg3[%c0_7, %c0_8] : memref<128x128xbf16, #tpu.memory_space<vmem>>, vector<128x128xbf16>
    %cst_9 = arith.constant dense<0.000000e+00> : vector<16x128xf32>
    %9 = tpu.matmul %7, %8, %cst_9 {dimension_numbers = #tpu.dot_dimension_numbers<[1], [0], [0], [1], [0, 0, 1, 1], [], []>} : vector<16x128xbf16>, vector<128x128xbf16>, vector<16x128xf32> -> vector<16x128xf32>
    %c0_10 = arith.constant 0 : index
    %c0_11 = arith.constant 0 : index
    %10 = vector.load %arg4[%c0_10, %c0_11] : memref<1x128xf32, #tpu.memory_space<vmem>>, vector<1x128xf32>
    %11 = vector.broadcast %10 : vector<1x128xf32> to vector<16x128xf32>
    %12 = arith.addf %9, %11 : vector<16x128xf32>
    %13 = math.tanh %12 : vector<16x128xf32>
    %c0_12 = arith.constant 0 : index
    %c0_13 = arith.constant 0 : index
    %14 = vector.load %arg7[%c0_12, %c0_13] : memref<1x128xf32, #tpu.memory_space<vmem>>, vector<1x128xf32>
    %15 = vector.broadcast %14 : vector<1x128xf32> to vector<16x128xf32>
    %16 = arith.mulf %6, %15 : vector<16x128xf32>
    %c0_14 = arith.constant 0 : index
    %c0_15 = arith.constant 0 : index
    %17 = vector.load %arg8[%c0_14, %c0_15] : memref<1x128xf32, #tpu.memory_space<vmem>>, vector<1x128xf32>
    %18 = vector.broadcast %17 : vector<1x128xf32> to vector<16x128xf32>
    %19 = arith.mulf %13, %18 : vector<16x128xf32>
    %20 = arith.addf %16, %19 : vector<16x128xf32>
    %cst_16 = arith.constant dense<0.000000e+00> : vector<16xf32>
    %21 = vector.multi_reduction <add>, %20, %cst_16 [1] : vector<16x128xf32> to vector<16xf32>
    %22 = vector.shape_cast %21 : vector<16xf32> to vector<16x1xf32>
    %c0_17 = arith.constant 0 : index
    %c0_18 = arith.constant 0 : index
    %23 = memref.load %arg9[%c0_17, %c0_18] : memref<1x1xf32, #tpu.memory_space<smem>>
    %24 = vector.broadcast %23 : f32 to vector<16x1xf32>
    %25 = arith.addf %22, %24 : vector<16x1xf32>
    %26 = arith.negf %25 : vector<16x1xf32>
    %27 = math.exp %26 : vector<16x1xf32>
    %cst_19 = arith.constant 1.000000e+00 : f32
    %28 = vector.broadcast %cst_19 : f32 to vector<16x1xf32>
    %29 = arith.addf %28, %27 : vector<16x1xf32>
    %30 = arith.divf %28, %29 : vector<16x1xf32>
    %31 = arith.subf %6, %13 : vector<16x128xf32>
    %32 = vector.broadcast %30 : vector<16x1xf32> to vector<16x128xf32>
    %33 = arith.mulf %32, %31 : vector<16x128xf32>
    %34 = arith.addf %13, %33 : vector<16x128xf32>
    %c0_20 = arith.constant 0 : index
    %c0_21 = arith.constant 0 : index
    %35 = vector.load %arg10[%c0_20, %c0_21] : memref<16x128xf32, #tpu.memory_space<vmem>>, vector<16x128xf32>
    tpu.vector_store %arg10[%c0_20, %c0_21], %34 {strides = array<i32>} : memref<16x128xf32, #tpu.memory_space<vmem>>, vector<16x128xf32>,
    return
  }
  func.func @transform_0(%arg0: i32) -> (i32, i32) {
    %c0_i32 = arith.constant 0 : i32
    %c0_i32_0 = arith.constant 0 : i32
    return %arg0, %c0_i32 : i32, i32
  }
  func.func @transform_1(%arg0: i32) -> (i32, i32) {
    %c0_i32 = arith.constant 0 : i32
    %c0_i32_0 = arith.constant 0 : i32
    return %arg0, %c0_i32 : i32, i32
  }
  func.func @transform_2(%arg0: i32) -> (i32, i32) {
    %c0_i32 = arith.constant 0 : i32
    %c0_i32_0 = arith.constant 0 : i32
    %c0_i32_1 = arith.constant 0 : i32
    return %c0_i32, %c0_i32_0 : i32, i32
  }
  func.func @transform_3(%arg0: i32) -> (i32, i32) {
    %c0_i32 = arith.constant 0 : i32
    %c0_i32_0 = arith.constant 0 : i32
    %c0_i32_1 = arith.constant 0 : i32
    return %c0_i32, %c0_i32_0 : i32, i32
  }
  func.func @transform_4(%arg0: i32) -> (i32, i32) {
    %c0_i32 = arith.constant 0 : i32
    %c0_i32_0 = arith.constant 0 : i32
    %c0_i32_1 = arith.constant 0 : i32
    return %c0_i32, %c0_i32_0 : i32, i32
  }
  func.func @transform_5(%arg0: i32) -> (i32, i32) {
    %c0_i32 = arith.constant 0 : i32
    %c0_i32_0 = arith.constant 0 : i32
    %c0_i32_1 = arith.constant 0 : i32
    return %c0_i32, %c0_i32_0 : i32, i32
  }
  func.func @transform_6(%arg0: i32) -> (i32, i32) {
    %c0_i32 = arith.constant 0 : i32
    %c0_i32_0 = arith.constant 0 : i32
    %c0_i32_1 = arith.constant 0 : i32
    return %c0_i32, %c0_i32_0 : i32, i32
  }
  func.func @transform_7(%arg0: i32) -> (i32, i32) {
    %c0_i32 = arith.constant 0 : i32
    %c0_i32_0 = arith.constant 0 : i32
    %c0_i32_1 = arith.constant 0 : i32
    return %c0_i32, %c0_i32_0 : i32, i32
  }
  func.func @transform_8(%arg0: i32) -> (i32, i32) {
    %c0_i32 = arith.constant 0 : i32
    %c0_i32_0 = arith.constant 0 : i32
    %c0_i32_1 = arith.constant 0 : i32
    return %c0_i32, %c0_i32_0 : i32, i32
  }
  func.func @transform_9(%arg0: i32) -> (i32, i32) {
    %c0_i32 = arith.constant 0 : i32
    %c0_i32_0 = arith.constant 0 : i32
    return %arg0, %c0_i32 : i32, i32
  }
}

</mosaic_0001>

<bundles_post_ra>
// kernel: tpu_custom_call.1
= control target key start
LH: loop header
LB: loop body
LE: loop exit
PB: predicated region body
PF: predicated region fallthrough
CT: control target
= control target key end

     0   :  { %15 = vsyncpa [#allocation4], 0  ;;  %s708_s0 = inlined_call_operand.hbm [shape: bf16[16,128], index: 0, kind: input, shape index: {}]   ;;  %s709_s1 = inlined_call_operand.hbm [shape: bf16[16,128], index: 1, kind: input, shape index: {}]   ;;  %s710_s2 = inlined_call_operand.hbm [shape: bf16[128,128], index: 2, kind: input, shape index: {}]   ;;  %s711_s3 = inlined_call_operand.vmem [shape: f32[1,128], index: 3, kind: input, shape index: {}]   ;;  %s712_s4 = inlined_call_operand.hbm [shape: bf16[128,128], index: 4, kind: input, shape index: {}]   ;;  %s713_s5 = inlined_call_operand.vmem [shape: f32[1,128], index: 5, kind: input, shape index: {}]   ;;  %s714_s6 = inlined_call_operand.vmem [shape: f32[1,128], index: 6, kind: input, shape index: {}]   ;;  %s715_s7 = inlined_call_operand.vmem [shape: f32[1,128], index: 7, kind: input, shape index: {}]   ;;  %s716_s8 = inlined_call_operand.<no memory space> [shape: f32[1,1], index: 8, kind: input, shape index: {}]   ;;  %s717_s9 = inlined_call_operand.hbm [shape: f32[16,128], index: 9, kind: output, shape index: {}]  }
   0x1   :  { %16 = vsyncpa [#allocation7], 0 }
   0x2   :  { %17 = vsyncpa [#allocation10], 0 }
   0x3   :  { %18 = vsyncpa [#allocation5], 0  ;;  %s36_s11 = sshll.u32 %s709_s1, 4  ;;  %s619_s12 = smov [#allocation6]   ;;  %s37_s11 = int_to_ptr.hbm [resolvable:$true] %s36_s11 }
   0x4   :  { %s38_s13 = sshll.u32 %s619_s12, 4  ;;  %s23_s16 = sshll.u32 %s708_s0, 4  ;;  %s39_s13 = int_to_ptr.vmem [resolvable:$true] %s38_s13  ;;  %s24_s16 = int_to_ptr.hbm [resolvable:$true] %s23_s16 }
   0x5   :  { %s620_s17 = smov 64   ;;  %s621_s18 = smov 4  }
   0x6   :  { %44 = dma.hbm_to_vmem [thread:$0]  %s37_s11, 128, %s39_s13, [#allocation7], %s620_s17, %s620_s17, %s621_s18  }
   0x7   :  { %s622_s19 = smov [#allocation3]   ;;  %s49_s23 = sshll.u32 %s710_s2, 4  ;;  %s50_s23 = int_to_ptr.hbm [resolvable:$true] %s49_s23 }
   0x8   :  { %s25_s20 = sshll.u32 %s622_s19, 4  ;;  %s64_s25 = sshll.u32 %s712_s4, 4  ;;  %s26_s20 = int_to_ptr.vmem [resolvable:$true] %s25_s20  ;;  %s65_s25 = int_to_ptr.hbm [resolvable:$true] %s64_s25 }
   0x9   :  { %31 = dma.hbm_to_vmem [thread:$0]  %s24_s16, 128, %s26_s20, [#allocation4], %s620_s17, %s620_s17, %s621_s18  }
   0xa   :  { %s623_s26 = smov [#allocation8]   ;;  %s624_s0 = smov [#allocation9]  }
   0xb   :  { %s51_s27 = sshll.u32 %s623_s26, 4  ;;  %s66_s28 = sshll.u32 %s624_s0, 4  ;;  %s52_s27 = int_to_ptr.vmem [resolvable:$true] %s51_s27  ;;  %s67_s28 = int_to_ptr.vmem [resolvable:$true] %s66_s28 }
   0xc   :  { %57 = dma.hbm_to_vmem [thread:$0]  %s50_s23, 1024, %s52_s27, [#allocation7], %s620_s17, %s620_s17, %s621_s18  }
   0xd   :  { %72 = dma.hbm_to_vmem [thread:$0]  %s65_s25, 1024, %s67_s28, [#allocation10], %s620_s17, %s620_s17, %s621_s18  }
   0xe   :  { %611 = dma.done.wait [#allocation4], 128  }
   0xf   :  { %612 = vsyncadd [#allocation4], 4294967168 }
  0x10   :  { %613 = dma.done.wait [#allocation7], 1152  }
  0x11   :  { %614 = vsyncadd [#allocation7], 4294966144 }
  0x12   :  { %615 = dma.done.wait [#allocation10], 1024  }
  0x13   :  { %616 = vsyncadd [#allocation10], 4294966272  ;;  %v452_v0 = vld [vmem:[#allocation9 + $0x38] sm:$0xff]  ;;  %v451_v2 = vld [vmem:[#allocation9 + $0x30] sm:$0xff]  ;;  %v300_v40 = vstv %s716_s8  ;;  %s355_s15 = sshll.u32 %s717_s9, 4  ;;  %s626_s16 = smov 128   ;;  %s356_s15 = int_to_ptr.hbm [resolvable:$true] %s355_s15 }
  0x14   :  { %v461_v1 = vld [vmem:[#allocation8 + $0x38] sm:$0xff]  ;;  %173 = vmatpush.bf16.msra.mxu0 %v452_v0  ;;  %v460_v3 = vld [vmem:[#allocation8 + $0x30] sm:$0xff]  ;;  %v450_v4 = vld [vmem:[#allocation9 + $0x28] sm:$0xff]  ;;  %s627_s17 = smov 8  }
  0x15   :  { %265 = vmatpush.bf16.msra.mxu1 %v461_v1  ;;  %v459_v5 = vld [vmem:[#allocation8 + $0x28] sm:$0xff]  ;;  %v449_v6 = vld [vmem:[#allocation9 + $0x20] sm:$0xff]  ;;  %v448_v8 = vld [vmem:[#allocation9 + $0x18] sm:$0xff] }
  0x16   :  { %v458_v7 = vld [vmem:[#allocation8 + $0x20] sm:$0xff]  ;;  %v457_v9 = vld [vmem:[#allocation8 + $0x18] sm:$0xff]  ;;  %v447_v10 = vld [vmem:[#allocation9 + $0x10] sm:$0xff] }
  0x17   :  { %v456_v11 = vld [vmem:[#allocation8 + $0x10] sm:$0xff]  ;;  %v446_v12 = vld [vmem:[#allocation9 + $0x8] sm:$0xff]  ;;  %v445_v14 = vld [vmem:[#allocation9] sm:$0xff] }
  0x18   :  { %174 = vmatpush.bf16.msra.mxu0 %v451_v2  ;;  %v455_v13 = vld [vmem:[#allocation8 + $0x8] sm:$0xff]  ;;  %v454_v15 = vld [vmem:[#allocation8] sm:$0xff]  ;;  %v444_v16 = vld [vmem:[#allocation6] sm:$0xff] }
  0x19   :  { %266 = vmatpush.bf16.msra.mxu1 %v460_v3  ;;  %v453_v17 = vld [vmem:[#allocation3] sm:$0xff] }
  0x1a   :  { %v471_v18 = vld [vmem:[%s713_s5] ss:$0 sm:$0xff] }
  0x1b   :  { %v472_v19 = vld [vmem:[%s711_s3] ss:$0 sm:$0xff] }
  0x1c   :  { %175 = vmatpush.bf16.msra.mxu0 %v450_v4  ;;  %v473_v24 = vld [vmem:[%s714_s6] ss:$0 sm:$0xff]  ;;  %s625_s6 = smov [#allocation11]  }
  0x1d   :  { %267 = vmatpush.bf16.msra.mxu1 %v459_v5  ;;  %v474_v25 = vld [vmem:[%s715_s7] ss:$0 sm:$0xff]  ;;  %s353_s7 = sshll.u32 %s625_s6, 4  ;;  %s354_s7 = int_to_ptr.vmem [resolvable:$true] %s353_s7 }
  0x20   :  { %176 = vmatpush.bf16.msra.mxu0 %v449_v6 }
  0x21   :  { %268 = vmatpush.bf16.msra.mxu1 %v458_v7 }
  0x24   :  { %177 = vmatpush.bf16.msra.mxu0 %v448_v8 }
  0x25   :  { %269 = vmatpush.bf16.msra.mxu1 %v457_v9 }
  0x28   :  { %178 = vmatpush.bf16.msra.mxu0 %v447_v10 }
  0x29   :  { %270 = vmatpush.bf16.msra.mxu1 %v456_v11 }
  0x2c   :  { %179 = vmatpush.bf16.msra.mxu0 %v446_v12 }
  0x2d   :  { %271 = vmatpush.bf16.msra.mxu1 %v455_v13 }
  0x30   :  { %180 = vmatpush.bf16.msra.mxu0 %v445_v14 }
  0x31   :  { %272 = vmatpush.bf16.msra.mxu1 %v454_v15 }
  0x33   :  { %181 = vmatmul.bf16.vlgmr.msra.gmra.mxu0 %v444_v16 }
  0x34   :  { %273 = vmatmul.bf16.vlgmr.msra.gmra.mxu1 %v453_v17 }
  0xb0   :  { %v182_v20 = vpop.f32.mrf.mxu0 }
  0xb1   :  { %v274_v21 = vpop.f32.mrf.mxu1  ;;  %v183_v22 = vadd.f32 %v471_v18, %v182_v20 }
  0xb2   :  { %v275_v23 = vadd.f32 %v472_v19, %v274_v21 }
  0xb3   :  { %475 = vtanh.f32 %v183_v22 }
  0xb4   :  { %477 = vtanh.f32 %v275_v23 }
  0xb8   :  { %v184_v26 = vpop.f32.mrf.mxu0 }
  0xb9   :  { %v276_v27 = vpop.f32.mrf.mxu1  ;;  %v476_v28 = vpop.eup %475  ;;  %v185_v29 = vadd.f32 %v471_v18, %v184_v26 }
  0xba   :  { %v277_v30 = vadd.f32 %v472_v19, %v276_v27  ;;  %v478_v31 = vpop.eup %477  ;;  %v285_v32 = vmul.f32 %v476_v28, %v473_v24 }
  0xbb   :  { %479 = vtanh.f32 %v185_v29  ;;  %v291_v33 = vmul.f32 %v478_v31, %v474_v25  ;;  %v341_v60 = vsub.f32 %v476_v28, %v478_v31 }
  0xbc   :  { %481 = vtanh.f32 %v277_v30 }
  0xbd   :  { %v293_v34 = vadd.f32 %v291_v33, %v285_v32 }
  0xbf   :  { %295 = vadd.xlane.f32.xlu0 %v293_v34 }
  0xc1   :  { %v480_v35 = vpop.eup %479 }
  0xc2   :  { %v482_v36 = vpop.eup %481  ;;  %v286_v37 = vmul.f32 %v480_v35, %v473_v24 }
  0xc3   :  { %v292_v38 = vmul.f32 %v482_v36, %v474_v25  ;;  %v342_v8 = vsub.f32 %v480_v35, %v482_v36 }
  0xc5   :  { %v294_v39 = vadd.f32 %v292_v38, %v286_v37 }
  0xc7   :  { %297 = vadd.xlane.f32.xlu0 %v294_v39 }
 0x132   :  { %v296_v41 = vpop.xlane.xlu0 %295 }
 0x133   :  { %v301_v42 = vadd.f32 %v300_v40, %v296_v41 }
 0x135   :  { %v442_v43 = vmul.f32 -1.442695, %v301_v42 }
 0x137   :  { %483 = vpow2.f32 %v442_v43 }
 0x13a   :  { %v298_v44 = vpop.xlane.xlu0 %297 }
 0x13b   :  { %v302_v45 = vadd.f32 %v300_v40, %v298_v44 }
 0x13d   :  { %v484_v46 = vpop.eup %483  ;;  %v443_v47 = vmul.f32 -1.442695, %v302_v45 }
 0x13e   :  { %v309_v48 = vadd.f32 1.0, %v484_v46 }
 0x13f   :  { %485 = vpow2.f32 %v443_v47 }
 0x140   :  { %487 = vrcp.f32 %v309_v48  ;;  %v322_v54 = vand.u32 2147483648, %v309_v48  ;;  %v320_v56 = vand.u32 2147483647, %v309_v48  ;;  %vm316_vm1 = vweird.f32 %v309_v48 }
 0x142   :  { %v323_v59 = vor.u32 1.1754944e-38, %v322_v54  ;;  %vm321_vm3 = vcmp.eq.f32.partialorder %v320_v56, 8.507059e+37 }
 0x145   :  { %v486_v49 = vpop.eup %485 }
 0x146   :  { %v488_v50 = vpop.eup %487  ;;  %v310_v51 = vadd.f32 1.0, %v486_v49 }
 0x147   :  { %v312_v52 = vmul.f32 %v488_v50, %v309_v48  ;;  %vm317_vm0 = vweird.f32 %v488_v50 }
 0x148   :  { %489 = vrcp.f32 %v310_v51  ;;  %vm318_vm2 = vmor %vm316_vm1, %vm317_vm0  ;;  %v337_v2 = vand.u32 2147483648, %v310_v51  ;;  %v335_v4 = vand.u32 2147483647, %v310_v51  ;;  %vm331_vm5 = vweird.f32 %v310_v51 }
 0x149   :  { %v313_v53 = vsub.f32 1.0, %v312_v52 }
 0x14a   :  { %v338_v7 = vor.u32 1.1754944e-38, %v337_v2  ;;  %vm336_vm7 = vcmp.eq.f32.partialorder %v335_v4, 8.507059e+37 }
 0x14b   :  { %v314_v55 = vmul.f32 %v488_v50, %v313_v53 }
 0x14d   :  { %v315_v57 = vadd.f32 %v488_v50, %v314_v55 }
 0x14e   :  { %v490_v58 = vpop.eup %489 }
 0x14f   :  { %v327_v61 = vmul.f32 %v490_v58, %v310_v51  ;;  %v319_v62 = vsel %vm318_vm2, %v488_v50, %v315_v57  ;;  %vm332_vm4 = vweird.f32 %v490_v58 }
 0x150   :  { %v324_v63 = vsel %vm321_vm3, %v323_v59, %v319_v62  ;;  %vm333_vm6 = vmor %vm331_vm5, %vm332_vm4 }
 0x151   :  { %v328_v0 = vsub.f32 1.0, %v327_v61  ;;  %v343_v1 = vmul.f32 %v341_v60, %v324_v63 }
 0x153   :  { %v329_v3 = vmul.f32 %v490_v58, %v328_v0  ;;  %v345_v5 = vadd.f32 %v478_v31, %v343_v1 }
 0x155   :  { %v330_v6 = vadd.f32 %v490_v58, %v329_v3  ;;  %347 = vst [vmem:[#allocation11] sm:$0xff] %v345_v5 }
 0x157   :  { %v334_v9 = vsel %vm333_vm6, %v490_v58, %v330_v6 }
 0x158   :  { %v339_v10 = vsel %vm336_vm7, %v338_v7, %v334_v9 }
 0x159   :  { %v344_v11 = vmul.f32 %v342_v8, %v339_v10 }
 0x15b   :  { %v346_v12 = vadd.f32 %v482_v36, %v344_v11 }
 0x15d   :  { %348 = vst [vmem:[#allocation11 + $0x8] sm:$0xff] %v346_v12 }
 0x15e   :  { %361 = dma.vmem_to_hbm [thread:$0]  %s354_s7, 256, %s356_s15, [#allocation5], %s626_s16, %s626_s16, %s627_s17  }
 0x15f   :  { %617 = dma.done.wait [#allocation5], 256  }
 0x160   :  { %618 = vsyncadd [#allocation5], 4294967040 }
 0x161   :  { %366 = vsyncpa [#allocation4], 1 }
 0x162   :  { %367 = vsyncpa [#allocation7], 1 }
 0x163   :  { %368 = vsyncpa [#allocation10], 1 }
 0x164   :  { %369 = vsyncpa [#allocation5], 1 }

// kernel: tpu_custom_call.1
= control target key start
LH: loop header
LB: loop body
LE: loop exit
PB: predicated region body
PF: predicated region fallthrough
CT: control target
= control target key end

     0   :  { %15 = vsyncpa [#allocation4], 0  ;;  %s708_s0 = inlined_call_operand.hbm [shape: bf16[16,128], index: 0, kind: input, shape index: {}]   ;;  %s709_s1 = inlined_call_operand.hbm [shape: bf16[16,128], index: 1, kind: input, shape index: {}]   ;;  %s710_s2 = inlined_call_operand.hbm [shape: bf16[128,128], index: 2, kind: input, shape index: {}]   ;;  %s711_s3 = inlined_call_operand.vmem [shape: f32[1,128], index: 3, kind: input, shape index: {}]   ;;  %s712_s4 = inlined_call_operand.hbm [shape: bf16[128,128], index: 4, kind: input, shape index: {}]   ;;  %s713_s5 = inlined_call_operand.vmem [shape: f32[1,128], index: 5, kind: input, shape index: {}]   ;;  %s714_s6 = inlined_call_operand.vmem [shape: f32[1,128], index: 6, kind: input, shape index: {}]   ;;  %s715_s7 = inlined_call_operand.vmem [shape: f32[1,128], index: 7, kind: input, shape index: {}]   ;;  %s716_s8 = inlined_call_operand.<no memory space> [shape: f32[1,1], index: 8, kind: input, shape index: {}]   ;;  %s717_s9 = inlined_call_operand.hbm [shape: f32[16,128], index: 9, kind: output, shape index: {}]  }
   0x1   :  { %16 = vsyncpa [#allocation7], 0 }
   0x2   :  { %17 = vsyncpa [#allocation10], 0 }
   0x3   :  { %18 = vsyncpa [#allocation5], 0  ;;  %s36_s11 = sshll.u32 %s709_s1, 4  ;;  %s619_s12 = smov [#allocation6]   ;;  %s37_s11 = int_to_ptr.hbm [resolvable:$true] %s36_s11 }
   0x4   :  { %s38_s13 = sshll.u32 %s619_s12, 4  ;;  %s23_s16 = sshll.u32 %s708_s0, 4  ;;  %s39_s13 = int_to_ptr.vmem [resolvable:$true] %s38_s13  ;;  %s24_s16 = int_to_ptr.hbm [resolvable:$true] %s23_s16 }
   0x5   :  { %s620_s17 = smov 64   ;;  %s621_s18 = smov 4  }
   0x6   :  { %44 = dma.hbm_to_vmem [thread:$0]  %s37_s11, 128, %s39_s13, [#allocation7], %s620_s17, %s620_s17, %s621_s18  }
   0x7   :  { %s622_s19 = smov [#allocation3]   ;;  %s49_s23 = sshll.u32 %s710_s2, 4  ;;  %s50_s23 = int_to_ptr.hbm [resolvable:$true] %s49_s23 }
   0x8   :  { %s25_s20 = sshll.u32 %s622_s19, 4  ;;  %s64_s25 = sshll.u32 %s712_s4, 4  ;;  %s26_s20 = int_to_ptr.vmem [resolvable:$true] %s25_s20  ;;  %s65_s25 = int_to_ptr.hbm [resolvable:$true] %s64_s25 }
   0x9   :  { %31 = dma.hbm_to_vmem [thread:$0]  %s24_s16, 128, %s26_s20, [#allocation4], %s620_s17, %s620_s17, %s621_s18  }
   0xa   :  { %s623_s26 = smov [#allocation8]   ;;  %s624_s0 = smov [#allocation9]  }
   0xb   :  { %s51_s27 = sshll.u32 %s623_s26, 4  ;;  %s66_s28 = sshll.u32 %s624_s0, 4  ;;  %s52_s27 = int_to_ptr.vmem [resolvable:$true] %s51_s27  ;;  %s67_s28 = int_to_ptr.vmem [resolvable:$true] %s66_s28 }
   0xc   :  { %57 = dma.hbm_to_vmem [thread:$0]  %s50_s23, 1024, %s52_s27, [#allocation7], %s620_s17, %s620_s17, %s621_s18  }
   0xd   :  { %72 = dma.hbm_to_vmem [thread:$0]  %s65_s25, 1024, %s67_s28, [#allocation10], %s620_s17, %s620_s17, %s621_s18  }
   0xe   :  { %611 = dma.done.wait [#allocation4], 128  }
   0xf   :  { %612 = vsyncadd [#allocation4], 4294967168 }
  0x10   :  { %613 = dma.done.wait [#allocation7], 1152  }
  0x11   :  { %614 = vsyncadd [#allocation7], 4294966144 }
  0x12   :  { %615 = dma.done.wait [#allocation10], 1024  }
  0x13   :  { %616 = vsyncadd [#allocation10], 4294966272  ;;  %v452_v0 = vld [vmem:[#allocation9 + $0x38] sm:$0xff]  ;;  %v451_v2 = vld [vmem:[#allocation9 + $0x30] sm:$0xff]  ;;  %v300_v40 = vstv %s716_s8  ;;  %s355_s15 = sshll.u32 %s717_s9, 4  ;;  %s626_s16 = smov 128   ;;  %s356_s15 = int_to_ptr.hbm [resolvable:$true] %s355_s15 }
  0x14   :  { %v461_v1 = vld [vmem:[#allocation8 + $0x38] sm:$0xff]  ;;  %173 = vmatpush.bf16.msra.mxu0 %v452_v0  ;;  %v460_v3 = vld [vmem:[#allocation8 + $0x30] sm:$0xff]  ;;  %v450_v4 = vld [vmem:[#allocation9 + $0x28] sm:$0xff]  ;;  %s627_s17 = smov 8  }
  0x15   :  { %265 = vmatpush.bf16.msra.mxu1 %v461_v1  ;;  %v459_v5 = vld [vmem:[#allocation8 + $0x28] sm:$0xff]  ;;  %v449_v6 = vld [vmem:[#allocation9 + $0x20] sm:$0xff]  ;;  %v448_v8 = vld [vmem:[#allocation9 + $0x18] sm:$0xff] }
  0x16   :  { %v458_v7 = vld [vmem:[#allocation8 + $0x20] sm:$0xff]  ;;  %v457_v9 = vld [vmem:[#allocation8 + $0x18] sm:$0xff]  ;;  %v447_v10 = vld [vmem:[#allocation9 + $0x10] sm:$0xff] }
  0x17   :  { %v456_v11 = vld [vmem:[#allocation8 + $0x10] sm:$0xff]  ;;  %v446_v12 = vld [vmem:[#allocation9 + $0x8] sm:$0xff]  ;;  %v445_v14 = vld [vmem:[#allocation9] sm:$0xff] }
  0x18   :  { %174 = vmatpush.bf16.msra.mxu0 %v451_v2  ;;  %v455_v13 = vld [vmem:[#allocation8 + $0x8] sm:$0xff]  ;;  %v454_v15 = vld [vmem:[#allocation8] sm:$0xff]  ;;  %v444_v16 = vld [vmem:[#allocation6] sm:$0xff] }
  0x19   :  { %266 = vmatpush.bf16.msra.mxu1 %v460_v3  ;;  %v453_v17 = vld [vmem:[#allocation3] sm:$0xff] }
  0x1a   :  { %v471_v18 = vld [vmem:[%s713_s5] ss:$0 sm:$0xff] }
  0x1b   :  { %v472_v19 = vld [vmem:[%s711_s3] ss:$0 sm:$0xff] }
  0x1c   :  { %175 = vmatpush.bf16.msra.mxu0 %v450_v4  ;;  %v473_v24 = vld [vmem:[%s714_s6] ss:$0 sm:$0xff]  ;;  %s625_s6 = smov [#allocation11]  }
  0x1d   :  { %267 = vmatpush.bf16.msra.mxu1 %v459_v5  ;;  %v474_v25 = vld [vmem:[%s715_s7] ss:$0 sm:$0xff]  ;;  %s353_s7 = sshll.u32 %s625_s6, 4  ;;  %s354_s7 = int_to_ptr.vmem [resolvable:$true] %s353_s7 }
  0x20   :  { %176 = vmatpush.bf16.msra.mxu0 %v449_v6 }
  0x21   :  { %268 = vmatpush.bf16.msra.mxu1 %v458_v7 }
  0x24   :  { %177 = vmatpush.bf16.msra.mxu0 %v448_v8 }
  0x25   :  { %269 = vmatpush.bf16.msra.mxu1 %v457_v9 }
  0x28   :  { %178 = vmatpush.bf16.msra.mxu0 %v447_v10 }
  0x29   :  { %270 = vmatpush.bf16.msra.mxu1 %v456_v11 }
  0x2c   :  { %179 = vmatpush.bf16.msra.mxu0 %v446_v12 }
  0x2d   :  { %271 = vmatpush.bf16.msra.mxu1 %v455_v13 }
  0x30   :  { %180 = vmatpush.bf16.msra.mxu0 %v445_v14 }
  0x31   :  { %272 = vmatpush.bf16.msra.mxu1 %v454_v15 }
  0x33   :  { %181 = vmatmul.bf16.vlgmr.msra.gmra.mxu0 %v444_v16 }
  0x34   :  { %273 = vmatmul.bf16.vlgmr.msra.gmra.mxu1 %v453_v17 }
  0xb0   :  { %v182_v20 = vpop.f32.mrf.mxu0 }
  0xb1   :  { %v274_v21 = vpop.f32.mrf.mxu1  ;;  %v183_v22 = vadd.f32 %v471_v18, %v182_v20 }
  0xb2   :  { %v275_v23 = vadd.f32 %v472_v19, %v274_v21 }
  0xb3   :  { %475 = vtanh.f32 %v183_v22 }
  0xb4   :  { %477 = vtanh.f32 %v275_v23 }
  0xb8   :  { %v184_v26 = vpop.f32.mrf.mxu0 }
  0xb9   :  { %v276_v27 = vpop.f32.mrf.mxu1  ;;  %v476_v28 = vpop.eup %475  ;;  %v185_v29 = vadd.f32 %v471_v18, %v184_v26 }
  0xba   :  { %v277_v30 = vadd.f32 %v472_v19, %v276_v27  ;;  %v478_v31 = vpop.eup %477  ;;  %v285_v32 = vmul.f32 %v476_v28, %v473_v24 }
  0xbb   :  { %479 = vtanh.f32 %v185_v29  ;;  %v291_v33 = vmul.f32 %v478_v31, %v474_v25  ;;  %v341_v60 = vsub.f32 %v476_v28, %v478_v31 }
  0xbc   :  { %481 = vtanh.f32 %v277_v30 }
  0xbd   :  { %v293_v34 = vadd.f32 %v291_v33, %v285_v32 }
  0xbf   :  { %295 = vadd.xlane.f32.xlu0 %v293_v34 }
  0xc1   :  { %v480_v35 = vpop.eup %479 }
  0xc2   :  { %v482_v36 = vpop.eup %481  ;;  %v286_v37 = vmul.f32 %v480_v35, %v473_v24 }
  0xc3   :  { %v292_v38 = vmul.f32 %v482_v36, %v474_v25  ;;  %v342_v8 = vsub.f32 %v480_v35, %v482_v36 }
  0xc5   :  { %v294_v39 = vadd.f32 %v292_v38, %v286_v37 }
  0xc7   :  { %297 = vadd.xlane.f32.xlu0 %v294_v39 }
 0x132   :  { %v296_v41 = vpop.xlane.xlu0 %295 }
 0x133   :  { %v301_v42 = vadd.f32 %v300_v40, %v296_v41 }
 0x135   :  { %v442_v43 = vmul.f32 -1.442695, %v301_v42 }
 0x137   :  { %483 = vpow2.f32 %v442_v43 }
 0x13a   :  { %v298_v44 = vpop.xlane.xlu0 %297 }
 0x13b   :  { %v302_v45 = vadd.f32 %v300_v40, %v298_v44 }
 0x13d   :  { %v484_v46 = vpop.eup %483  ;;  %v443_v47 = vmul.f32 -1.442695, %v302_v45 }
 0x13e   :  { %v309_v48 = vadd.f32 1.0, %v484_v46 }
 0x13f   :  { %485 = vpow2.f32 %v443_v47 }
 0x140   :  { %487 = vrcp.f32 %v309_v48  ;;  %v322_v54 = vand.u32 2147483648, %v309_v48  ;;  %v320_v56 = vand.u32 2147483647, %v309_v48  ;;  %vm316_vm1 = vweird.f32 %v309_v48 }
 0x142   :  { %v323_v59 = vor.u32 1.1754944e-38, %v322_v54  ;;  %vm321_vm3 = vcmp.eq.f32.partialorder %v320_v56, 8.507059e+37 }
 0x145   :  { %v486_v49 = vpop.eup %485 }
 0x146   :  { %v488_v50 = vpop.eup %487  ;;  %v310_v51 = vadd.f32 1.0, %v486_v49 }
 0x147   :  { %v312_v52 = vmul.f32 %v488_v50, %v309_v48  ;;  %vm317_vm0 = vweird.f32 %v488_v50 }
 0x148   :  { %489 = vrcp.f32 %v310_v51  ;;  %vm318_vm2 = vmor %vm316_vm1, %vm317_vm0  ;;  %v337_v2 = vand.u32 2147483648, %v310_v51  ;;  %v335_v4 = vand.u32 2147483647, %v310_v51  ;;  %vm331_vm5 = vweird.f32 %v310_v51 }
 0x149   :  { %v313_v53 = vsub.f32 1.0, %v312_v52 }
 0x14a   :  { %v338_v7 = vor.u32 1.1754944e-38, %v337_v2  ;;  %vm336_vm7 = vcmp.eq.f32.partialorder %v335_v4, 8.507059e+37 }
 0x14b   :  { %v314_v55 = vmul.f32 %v488_v50, %v313_v53 }
 0x14d   :  { %v315_v57 = vadd.f32 %v488_v50, %v314_v55 }
 0x14e   :  { %v490_v58 = vpop.eup %489 }
 0x14f   :  { %v327_v61 = vmul.f32 %v490_v58, %v310_v51  ;;  %v319_v62 = vsel %vm318_vm2, %v488_v50, %v315_v57  ;;  %vm332_vm4 = vweird.f32 %v490_v58 }
 0x150   :  { %v324_v63 = vsel %vm321_vm3, %v323_v59, %v319_v62  ;;  %vm333_vm6 = vmor %vm331_vm5, %vm332_vm4 }
 0x151   :  { %v328_v0 = vsub.f32 1.0, %v327_v61  ;;  %v343_v1 = vmul.f32 %v341_v60, %v324_v63 }
 0x153   :  { %v329_v3 = vmul.f32 %v490_v58, %v328_v0  ;;  %v345_v5 = vadd.f32 %v478_v31, %v343_v1 }
 0x155   :  { %v330_v6 = vadd.f32 %v490_v58, %v329_v3  ;;  %347 = vst [vmem:[#allocation11] sm:$0xff] %v345_v5 }
 0x157   :  { %v334_v9 = vsel %vm333_vm6, %v490_v58, %v330_v6 }
 0x158   :  { %v339_v10 = vsel %vm336_vm7, %v338_v7, %v334_v9 }
 0x159   :  { %v344_v11 = vmul.f32 %v342_v8, %v339_v10 }
 0x15b   :  { %v346_v12 = vadd.f32 %v482_v36, %v344_v11 }
 0x15d   :  { %348 = vst [vmem:[#allocation11 + $0x8] sm:$0xff] %v346_v12 }
 0x15e   :  { %361 = dma.vmem_to_hbm [thread:$0]  %s354_s7, 256, %s356_s15, [#allocation5], %s626_s16, %s626_s16, %s627_s17  }
 0x15f   :  { %617 = dma.done.wait [#allocation5], 256  }
 0x160   :  { %618 = vsyncadd [#allocation5], 4294967040 }
 0x161   :  { %366 = vsyncpa [#allocation4], 1 }
 0x162   :  { %367 = vsyncpa [#allocation7], 1 }
 0x163   :  { %368 = vsyncpa [#allocation10], 1 }
 0x164   :  { %369 = vsyncpa [#allocation5], 1 }

</bundles_post_ra>
